<compile_context>
chip_gen: v5e
topology: v5e:2x2
jax: 0.10.0
libtpu: 0.0.40
codegen_flags: <defaults>
</compile_context>

<pallas_src>
import functools

import numpy as np
import jax
import jax.numpy as jnp
from jax import lax
from jax.experimental import pallas as pl
from jax.experimental.pallas import tpu as pltpu


def _build_polyphase_weight(w_pt):
    """w_pt: (Cin, Cout, 3, 3) PyTorch ConvTranspose2d layout.

    Returns Wbig (4*Cin, 4*Cout):
      rows    blocked by tap        t = dm*2 + dq  (input offset (dm, dq)),
      columns blocked by sub-pixel  p = ph*2 + pw  (output parity (ph, pw)).
    Derivation: y[2m+ph, 2q+pw] += x[m+dm, q+dq] * W[:, :, kh, kw] with
    kh = ph - 2*dm + 1, kw = pw - 2*dq + 1 whenever both lie in [0, 2].
    """
    Cin, Cout = w_pt.shape[0], w_pt.shape[1]
    wbig = jnp.zeros((4 * Cin, 4 * Cout), w_pt.dtype)
    for dm in (0, 1):
        for dq in (0, 1):
            t = dm * 2 + dq
            for ph in (0, 1):
                for pw in (0, 1):
                    p = ph * 2 + pw
                    kh = ph - 2 * dm + 1
                    kw = pw - 2 * dq + 1
                    if 0 <= kh <= 2 and 0 <= kw <= 2:
                        wbig = wbig.at[t * Cin:(t + 1) * Cin,
                                       p * Cout:(p + 1) * Cout].set(w_pt[:, :, kh, kw])
    return wbig


def _pick_tile_rows(H, W, Cin, Cout, itemsize):
    """Largest multiple-of-8 row tile that fits a conservative VMEM budget and
    gives the MXU a healthy M (= TH*W)."""
    if H <= 8:
        return H
    budget = 8 * 1024 * 1024                       # per-stage activation budget (headroom in 32 MiB scoped VMEM)
    per_row = W * ((Cin + 4 * Cout) * itemsize * 2     # double-buffered in/out blocks
                   + (4 * Cin + 8 * Cout) * 4)         # f32 taps + accumulator live in-kernel
    th = 8
    while (th + 8 <= H
           and th * W < 512                        # grow until M >= 512
           and (th + 8) * W <= 4096                # cap M
           and (th + 8) * per_row <= budget):
        th += 8
    return th


def _kernel(x_ref, h_ref, w_ref, b_ref, o_ref, *, TH, W, Cin, Cout):
    # x_ref: (1, TH, W, Cin)      input rows [r*TH, r*TH+TH)
    # h_ref: (1, 1,  W, Cin)      halo row r*TH+TH (value only matters when < H)
    # w_ref: (4, Cin, 4*Cout)     per-tap weights, tap t = dm*2 + dq
    # b_ref: (1, 4*Cout)          bias tiled over the 4 sub-pixels (f32)
    # o_ref: (1, TH, 2, W, 2*Cout) output in (m, ph, q, pw*Cout+co) order
    xt = x_ref[0]                                   # (TH, W, Cin)  x[m, q]
    hl = h_ref[0]                                   # (1,  W, Cin)  x[tile_end, q]

    # +1 column shift (x[., q+1]) == roll by -1 along the q axis.  The wrapped
    # column q = W-1 only feeds output column 2W-1, which is cropped, so no
    # masking is needed.
    xt_s = jnp.concatenate([xt[:, 1:, :], xt[:, :1, :]], axis=1)
    hl_s = jnp.concatenate([hl[:, 1:, :], hl[:, :1, :]], axis=1)

    # +1 row shift (x[m+1, q]) via leading-axis concat with the halo row — no
    # sublane relayout.  The halo value of the last tile only feeds output row
    # 2H-1, which is cropped.
    if TH > 1:
        xb = jnp.concatenate([xt[1:], hl], axis=0)        # (TH, W, Cin)
        xb_s = jnp.concatenate([xt_s[1:], hl_s], axis=0)
    else:
        xb, xb_s = hl, hl_s

    taps = (xt, xt_s, xb, xb_s)                     # tap order t = dm*2 + dq

    # Four accumulating MXU matmuls (native-dtype operands, f32 accumulation).
    acc = jnp.zeros((TH * W, 4 * Cout), jnp.float32)
    for t in range(4):
        acc = acc + jnp.dot(taps[t].reshape(TH * W, Cin), w_ref[t],
                            preferred_element_type=jnp.float32)
    acc = acc + b_ref[...].astype(jnp.float32)      # single broadcast add

    # Columns [0, 2*Cout) are ph=0, [2*Cout, 4*Cout) are ph=1 (each (pw, co)),
    # so the store is already in depth-to-space order.
    accr = acc.reshape(TH, W, 4 * Cout)
    o_ref[0, :, 0, :, :] = accr[:, :, : 2 * Cout].astype(o_ref.dtype)
    o_ref[0, :, 1, :, :] = accr[:, :, 2 * Cout:].astype(o_ref.dtype)


def conv_transposed_3x3(x_nchw, w_pt, b):
    """x_nchw: (N, Cin, H, W); w_pt: (Cin, Cout, 3, 3) (PyTorch ConvTranspose2d
    layout); b: (Cout,). Returns (N, Cout, 2H-1, 2W-1) matching PyTorch."""
    N, Cin, H, W = x_nchw.shape
    Cout = w_pt.shape[1]
    OH, OW = 2 * H - 1, 2 * W - 1

    # Interface layout glue (NCHW -> NHWC); no padding pass is needed.
    x = jnp.transpose(x_nchw, (0, 2, 3, 1))              # (N, H, W, Cin)

    TH = _pick_tile_rows(H, W, Cin, Cout, x.dtype.itemsize)
    R = pl.cdiv(H, TH)

    # Per-tile halo row (r+1)*TH — a tiny gather (~1/TH of the input).  Rows
    # beyond H-1 are clamped: they only feed output row 2H-1, which is cropped.
    row_ids = np.minimum((np.arange(R) + 1) * TH, H - 1)
    halo = x[:, row_ids, :, :]                           # (N, R, W, Cin)

    # Polyphase weights in the compute dtype, per-tap leading axis so the kernel
    # indexes taps without sublane relayout; bias stays f32 (added to f32 acc).
    w4 = _build_polyphase_weight(w_pt).astype(x.dtype).reshape(4, Cin, 4 * Cout)
    b4 = jnp.tile(b, 4).reshape(1, 4 * Cout).astype(jnp.float32)

    kern = functools.partial(_kernel, TH=TH, W=W, Cin=Cin, Cout=Cout)

    out = pl.pallas_call(
        kern,
        out_shape=jax.ShapeDtypeStruct((N, H, 2, W, 2 * Cout), x.dtype),
        grid_spec=pltpu.PrefetchScalarGridSpec(
            num_scalar_prefetch=0,
            grid=(N, R),
            in_specs=[
                pl.BlockSpec((1, TH, W, Cin), lambda n, r: (n, r, 0, 0)),
                pl.BlockSpec((1, 1, W, Cin), lambda n, r: (n, r, 0, 0)),
                pl.BlockSpec((4, Cin, 4 * Cout), lambda n, r: (0, 0, 0)),
                pl.BlockSpec((1, 4 * Cout), lambda n, r: (0, 0)),
            ],
            out_specs=pl.BlockSpec((1, TH, 2, W, 2 * Cout),
                                   lambda n, r: (n, r, 0, 0, 0)),
        ),
        compiler_params=pltpu.CompilerParams(
            dimension_semantics=("parallel", "parallel"),
            vmem_limit_bytes=32 * 1024 * 1024),
    )(x, halo, w4, b4)

    # Depth-to-space is now a pure row-major reshape; then crop and return NCHW.
    y = out.reshape(N, 2 * H, 2 * W, Cout)[:, :OH, :OW, :]
    return jnp.transpose(y, (0, 3, 1, 2))


def _reference(x_nchw, w_pt, b):
    # Independent reference (pure XLA): conv_transpose == dilated regular conv
    # with flipped, transposed weights.
    w_oihw = jnp.transpose(w_pt, (1, 0, 2, 3))[:, :, ::-1, ::-1]
    y = lax.conv_general_dilated(
        x_nchw, w_oihw,
        window_strides=(1, 1),
        padding=[(1, 1), (1, 1)],
        lhs_dilation=(2, 2),
        dimension_numbers=("NCHW", "OIHW", "NCHW"))
    return y + b[None, :, None, None]


if __name__ == "__main__":
    # Module config implied by ConvTransposed3x3 defaults: bias=True, no norm/act.
    N, Cin, Cout, H, W = 2, 4, 8, 16, 16

    key = jax.random.PRNGKey(0)
    kx, kw, kb = jax.random.split(key, 3)
    x = jax.random.normal(kx, (N, Cin, H, W), jnp.float32)
    # PyTorch ConvTranspose2d weight layout: (in_ch, out_ch, 3, 3)
    w = jax.random.normal(kw, (Cin, Cout, 3, 3), jnp.float32) * 0.1
    b = jax.random.normal(kb, (Cout,), jnp.float32) * 0.1

    y = jax.jit(conv_transposed_3x3)(x, w, b)
    y = jax.block_until_ready(y)

    y_ref = _reference(x, w, b)
    assert y.shape == (N, Cout, 2 * H - 1, 2 * W - 1), y.shape
    err = float(jnp.max(jnp.abs(y - y_ref)))
    assert jnp.allclose(y, y_ref, atol=1e-4, rtol=1e-4), err

    print("KERNEL_OK")
</pallas_src>

<mosaic_0001>
module attributes {stable_mosaic.version = 11 : i64} {
  func.func @_kernel(%arg0: i32, %arg1: i32, %arg2: memref<1x16x16x4xf32, #tpu.memory_space<vmem>>, %arg3: memref<1x1x16x4xf32, #tpu.memory_space<vmem>>, %arg4: memref<4x4x32xf32, #tpu.memory_space<vmem>>, %arg5: memref<1x32xf32, #tpu.memory_space<vmem>>, %arg6: memref<1x16x2x16x16xf32, #tpu.memory_space<vmem>>) attributes {dimension_semantics = [#tpu.dimension_semantics<parallel>, #tpu.dimension_semantics<parallel>], iteration_bounds = array<i64: 2, 1>, scalar_prefetch = 0 : i64, scratch_operands = 0 : i64, tpu.core_type = #tpu.core_type<tc>, window_params = [{transform_indices = @transform_0, window_bounds = array<i64: 1, 16, 16, 4>}, {transform_indices = @transform_1, window_bounds = array<i64: 1, 1, 16, 4>}, {pipeline_mode = #tpu.pipeline_mode<synchronous>, transform_indices = @transform_2, window_bounds = array<i64: 4, 4, 32>}, {pipeline_mode = #tpu.pipeline_mode<synchronous>, transform_indices = @transform_3, window_bounds = array<i64: 1, 32>}, {transform_indices = @transform_4, window_bounds = array<i64: 1, 16, 2, 16, 16>}]} {
    %c0 = arith.constant 0 : index
    %c0_0 = arith.constant 0 : index
    %c0_1 = arith.constant 0 : index
    %c0_2 = arith.constant 0 : index
    %0 = vector.load %arg2[%c0, %c0_0, %c0_1, %c0_2] : memref<1x16x16x4xf32, #tpu.memory_space<vmem>>, vector<1x16x16x4xf32>
    %1 = vector.shape_cast %0 : vector<1x16x16x4xf32> to vector<16x16x4xf32>
    %c0_3 = arith.constant 0 : index
    %c0_4 = arith.constant 0 : index
    %c0_5 = arith.constant 0 : index
    %c0_6 = arith.constant 0 : index
    %2 = vector.load %arg3[%c0_3, %c0_4, %c0_5, %c0_6] : memref<1x1x16x4xf32, #tpu.memory_space<vmem>>, vector<1x1x16x4xf32>
    %3 = vector.shape_cast %2 : vector<1x1x16x4xf32> to vector<1x16x4xf32>
    %4 = vector.extract_strided_slice %1 {offsets = [0, 1, 0], sizes = [16, 15, 4], strides = [1, 1, 1]} : vector<16x16x4xf32> to vector<16x15x4xf32>
    %5 = vector.extract_strided_slice %1 {offsets = [0, 0, 0], sizes = [16, 1, 4], strides = [1, 1, 1]} : vector<16x16x4xf32> to vector<16x1x4xf32>
    %6 = tpu.concatenate %4, %5 in 1 : vector<16x15x4xf32>, vector<16x1x4xf32> -> vector<16x16x4xf32>
    %7 = vector.extract_strided_slice %3 {offsets = [0, 1, 0], sizes = [1, 15, 4], strides = [1, 1, 1]} : vector<1x16x4xf32> to vector<1x15x4xf32>
    %8 = vector.extract_strided_slice %3 {offsets = [0, 0, 0], sizes = [1, 1, 4], strides = [1, 1, 1]} : vector<1x16x4xf32> to vector<1x1x4xf32>
    %9 = tpu.concatenate %7, %8 in 1 : vector<1x15x4xf32>, vector<1x1x4xf32> -> vector<1x16x4xf32>
    %10 = vector.extract_strided_slice %1 {offsets = [1, 0, 0], sizes = [15, 16, 4], strides = [1, 1, 1]} : vector<16x16x4xf32> to vector<15x16x4xf32>
    %11 = tpu.concatenate %10, %3 in 0 : vector<15x16x4xf32>, vector<1x16x4xf32> -> vector<16x16x4xf32>
    %12 = vector.extract_strided_slice %6 {offsets = [1, 0, 0], sizes = [15, 16, 4], strides = [1, 1, 1]} : vector<16x16x4xf32> to vector<15x16x4xf32>
    %13 = tpu.concatenate %12, %9 in 0 : vector<15x16x4xf32>, vector<1x16x4xf32> -> vector<16x16x4xf32>
    %cst = arith.constant 0.000000e+00 : f32
    %14 = vector.broadcast %cst : f32 to vector<256x32xf32>
    %15 = vector.shape_cast %1 : vector<16x16x4xf32> to vector<256x4xf32>
    %c0_7 = arith.constant 0 : index
    %c0_8 = arith.constant 0 : index
    %c0_9 = arith.constant 0 : index
    %16 = vector.load %arg4[%c0_7, %c0_8, %c0_9] : memref<4x4x32xf32, #tpu.memory_space<vmem>>, vector<1x4x32xf32>
    %17 = vector.shape_cast %16 : vector<1x4x32xf32> to vector<4x32xf32>
    %cst_10 = arith.constant dense<0.000000e+00> : vector<256x32xf32>
    %18 = tpu.matmul %15, %17, %cst_10 {dimension_numbers = #tpu.dot_dimension_numbers<[1], [0], [0], [1], [0, 0, 1, 1], [], []>} : vector<256x4xf32>, vector<4x32xf32>, vector<256x32xf32> -> vector<256x32xf32>
    %19 = arith.addf %14, %18 : vector<256x32xf32>
    %20 = vector.shape_cast %6 : vector<16x16x4xf32> to vector<256x4xf32>
    %c1 = arith.constant 1 : index
    %c0_11 = arith.constant 0 : index
    %c0_12 = arith.constant 0 : index
    %21 = vector.load %arg4[%c1, %c0_11, %c0_12] : memref<4x4x32xf32, #tpu.memory_space<vmem>>, vector<1x4x32xf32>
    %22 = vector.shape_cast %21 : vector<1x4x32xf32> to vector<4x32xf32>
    %cst_13 = arith.constant dense<0.000000e+00> : vector<256x32xf32>
    %23 = tpu.matmul %20, %22, %cst_13 {dimension_numbers = #tpu.dot_dimension_numbers<[1], [0], [0], [1], [0, 0, 1, 1], [], []>} : vector<256x4xf32>, vector<4x32xf32>, vector<256x32xf32> -> vector<256x32xf32>
    %24 = arith.addf %19, %23 : vector<256x32xf32>
    %25 = vector.shape_cast %11 : vector<16x16x4xf32> to vector<256x4xf32>
    %c2 = arith.constant 2 : index
    %c0_14 = arith.constant 0 : index
    %c0_15 = arith.constant 0 : index
    %26 = vector.load %arg4[%c2, %c0_14, %c0_15] : memref<4x4x32xf32, #tpu.memory_space<vmem>>, vector<1x4x32xf32>
    %27 = vector.shape_cast %26 : vector<1x4x32xf32> to vector<4x32xf32>
    %cst_16 = arith.constant dense<0.000000e+00> : vector<256x32xf32>
    %28 = tpu.matmul %25, %27, %cst_16 {dimension_numbers = #tpu.dot_dimension_numbers<[1], [0], [0], [1], [0, 0, 1, 1], [], []>} : vector<256x4xf32>, vector<4x32xf32>, vector<256x32xf32> -> vector<256x32xf32>
    %29 = arith.addf %24, %28 : vector<256x32xf32>
    %30 = vector.shape_cast %13 : vector<16x16x4xf32> to vector<256x4xf32>
    %c3 = arith.constant 3 : index
    %c0_17 = arith.constant 0 : index
    %c0_18 = arith.constant 0 : index
    %31 = vector.load %arg4[%c3, %c0_17, %c0_18] : memref<4x4x32xf32, #tpu.memory_space<vmem>>, vector<1x4x32xf32>
    %32 = vector.shape_cast %31 : vector<1x4x32xf32> to vector<4x32xf32>
    %cst_19 = arith.constant dense<0.000000e+00> : vector<256x32xf32>
    %33 = tpu.matmul %30, %32, %cst_19 {dimension_numbers = #tpu.dot_dimension_numbers<[1], [0], [0], [1], [0, 0, 1, 1], [], []>} : vector<256x4xf32>, vector<4x32xf32>, vector<256x32xf32> -> vector<256x32xf32>
    %34 = arith.addf %29, %33 : vector<256x32xf32>
    %c0_20 = arith.constant 0 : index
    %c0_21 = arith.constant 0 : index
    %35 = vector.load %arg5[%c0_20, %c0_21] : memref<1x32xf32, #tpu.memory_space<vmem>>, vector<1x32xf32>
    %36 = vector.broadcast %35 : vector<1x32xf32> to vector<256x32xf32>
    %37 = arith.addf %34, %36 : vector<256x32xf32>
    %38 = vector.shape_cast %37 : vector<256x32xf32> to vector<16x16x32xf32>
    %39 = vector.extract_strided_slice %38 {offsets = [0, 0, 0], sizes = [16, 16, 16], strides = [1, 1, 1]} : vector<16x16x32xf32> to vector<16x16x16xf32>
    %c0_22 = arith.constant 0 : index
    %c0_23 = arith.constant 0 : index
    %c0_24 = arith.constant 0 : index
    %c0_25 = arith.constant 0 : index
    %c0_26 = arith.constant 0 : index
    %40 = vector.load %arg6[%c0_22, %c0_23, %c0_24, %c0_25, %c0_26] : memref<1x16x2x16x16xf32, #tpu.memory_space<vmem>>, vector<1x16x1x16x16xf32>
    %41 = vector.shape_cast %40 : vector<1x16x1x16x16xf32> to vector<16x16x16xf32>
    %42 = vector.shape_cast %39 : vector<16x16x16xf32> to vector<1x16x1x16x16xf32>
    tpu.vector_store %arg6[%c0_22, %c0_23, %c0_24, %c0_25, %c0_26], %42 {strides = array<i32>} : memref<1x16x2x16x16xf32, #tpu.memory_space<vmem>>, vector<1x16x1x16x16xf32>,
    %43 = vector.extract_strided_slice %38 {offsets = [0, 0, 16], sizes = [16, 16, 16], strides = [1, 1, 1]} : vector<16x16x32xf32> to vector<16x16x16xf32>
    %c0_27 = arith.constant 0 : index
    %c0_28 = arith.constant 0 : index
    %c1_29 = arith.constant 1 : index
    %c0_30 = arith.constant 0 : index
    %c0_31 = arith.constant 0 : index
    %44 = vector.load %arg6[%c0_27, %c0_28, %c1_29, %c0_30, %c0_31] : memref<1x16x2x16x16xf32, #tpu.memory_space<vmem>>, vector<1x16x1x16x16xf32>
    %45 = vector.shape_cast %44 : vector<1x16x1x16x16xf32> to vector<16x16x16xf32>
    %46 = vector.shape_cast %43 : vector<16x16x16xf32> to vector<1x16x1x16x16xf32>
    tpu.vector_store %arg6[%c0_27, %c0_28, %c1_29, %c0_30, %c0_31], %46 {strides = array<i32>} : memref<1x16x2x16x16xf32, #tpu.memory_space<vmem>>, vector<1x16x1x16x16xf32>,
    return
  }
  func.func @transform_0(%arg0: i32, %arg1: i32) -> (i32, i32, i32, i32) {
    %c0_i32 = arith.constant 0 : i32
    %c0_i32_0 = arith.constant 0 : i32
    %c0_i32_1 = arith.constant 0 : i32
    return %arg0, %arg1, %c0_i32, %c0_i32_0 : i32, i32, i32, i32
  }
  func.func @transform_1(%arg0: i32, %arg1: i32) -> (i32, i32, i32, i32) {
    %c0_i32 = arith.constant 0 : i32
    %c0_i32_0 = arith.constant 0 : i32
    %c0_i32_1 = arith.constant 0 : i32
    return %arg0, %arg1, %c0_i32, %c0_i32_0 : i32, i32, i32, i32
  }
  func.func @transform_2(%arg0: i32, %arg1: i32) -> (i32, i32, i32) {
    %c0_i32 = arith.constant 0 : i32
    %c0_i32_0 = arith.constant 0 : i32
    %c0_i32_1 = arith.constant 0 : i32
    %c0_i32_2 = arith.constant 0 : i32
    return %c0_i32, %c0_i32_0, %c0_i32_1 : i32, i32, i32
  }
  func.func @transform_3(%arg0: i32, %arg1: i32) -> (i32, i32) {
    %c0_i32 = arith.constant 0 : i32
    %c0_i32_0 = arith.constant 0 : i32
    %c0_i32_1 = arith.constant 0 : i32
    return %c0_i32, %c0_i32_0 : i32, i32
  }
  func.func @transform_4(%arg0: i32, %arg1: i32) -> (i32, i32, i32, i32, i32) {
    %c0_i32 = arith.constant 0 : i32
    %c0_i32_0 = arith.constant 0 : i32
    %c0_i32_1 = arith.constant 0 : i32
    %c0_i32_2 = arith.constant 0 : i32
    return %arg0, %arg1, %c0_i32, %c0_i32_0, %c0_i32_1 : i32, i32, i32, i32, i32
  }
}

</mosaic_0001>

<bundles_post_ra>
// kernel: tile.8
= control target key start
LH: loop header
LB: loop body
LE: loop exit
PB: predicated region body
PF: predicated region fallthrough
CT: control target
= control target key end

     0   :  { %2 = vsyncpa [#allocation1], 0  ;;  %s48_s8 = smov [#allocation0]   ;;  %s65_s0 = inlined_call_operand.hbm [shape: f32[8], index: 0, kind: input, shape index: {}]   ;;  %s66_s1 = inlined_call_operand.vmem [shape: f32[4,8], index: 1, kind: output, shape index: {}]  }
   0x1   :  { %s8_s0 = sshll.u32 %s65_s0, 4  ;;  %s10_s9 = sshll.u32 %s48_s8, 4  ;;  %s9_s0 = int_to_ptr.hbm [resolvable:$true] %s8_s0  ;;  %s11_s9 = int_to_ptr.vmem [resolvable:$true] %s10_s9 }
   0x2   :  { %13 = dma.hbm_to_vmem [thread:$0]  %s9_s0, 16, %s11_s9, [#allocation1]  }
   0x3   :  { %46 = dma.done.wait [#allocation1], 16  }
   0x4   :  { %47 = vsyncadd [#allocation1], 4294967280  ;;  %v18_v0 = vld [vmem:[#allocation0] ss:$0 sm:$0xff] }
   0x5   :  { %19 = vst [vmem:[%s66_s1] sm:$0xf] %v18_v0 }
   0x6   :  { %20 = vsyncpa [#allocation1], 1 }

// kernel: tile.9
= control target key start
LH: loop header
LB: loop body
LE: loop exit
PB: predicated region body
PF: predicated region fallthrough
CT: control target
= control target key end

     0   :  { %s37_s8 = smov 8   ;;  %s38_s9 = smov 16   ;;  %vm7_vm0 = vcmask 64512   ;;  %vm13_vm1 = vcmask 261312   ;;  %vm19_vm2 = vcmask 195712   ;;  %vm25_vm3 = vcmask 130112   ;;  %s55_s0 = inlined_call_operand.vmem [shape: f32[4,8], index: 0, kind: input, shape index: {}]   ;;  %s56_s1 = inlined_call_operand.vmem [shape: f32[1,32], index: 1, kind: output, shape index: {}]  }
   0x1   :  { %v4_v0 = vld [vmem:[%s55_s0] sm:$0xf]  ;;  %s36_s0 = smov 24  }
   0x2   :  { %5 = vst [vmem:[#allocation1] sm:$0xf] %v4_v0 }
   0x9   :  { %v10_v1 = vld [vmem:[#allocation1 + $0x3] sm:$0x1]   ;;  %v22_v2 = vld [vmem:[#allocation1 + $0x1] sm:$0x1]   ;;  %v16_v3 = vld [vmem:[#allocation1 + $0x2] sm:$0x1]  }
   0xa   :  { %11 = vrot.lane.b32.xlu0 %v10_v1, %s36_s0  ;;  %23 = vrot.lane.b32.xlu1 %v22_v2, %s37_s8  ;;  %v6_v4 = vld [vmem:[#allocation1] sm:$0x1]  }
   0xb   :  { %8 = vst.msk [vmem:[#allocation0] sm:$0x1] %vm7_vm0, %v6_v4  }
  0x12   :  { %17 = vrot.lane.b32.xlu0 %v16_v3, %s38_s9 }
  0x7c   :  { %v12_v5 = vpop.permute.xlu0 %11   ;;  %v24_v6 = vpop.permute.xlu1 %23  }
  0x7d   :  { %14 = vst.msk [vmem:[#allocation0] sm:$0x1] %vm13_vm1, %v12_v5  }
  0x84   :  { %v18_v7 = vpop.permute.xlu0 %17  }
  0x85   :  { %20 = vst.msk [vmem:[#allocation0] sm:$0x1] %vm19_vm2, %v18_v7  }
  0x86   :  { %26 = vst.msk [vmem:[#allocation0] sm:$0x1] %vm25_vm3, %v24_v6  }
  0x8d   :  { %v29_v8 = vld [vmem:[#allocation0] sm:$0x1] }
  0x8e   :  { %32 = vst [vmem:[%s56_s1] sm:$0x1] %v29_v8 }

// kernel: conv_transposed_3x3.1
= control target key start
LH: loop header
LB: loop body
LE: loop exit
PB: predicated region body
PF: predicated region fallthrough
CT: control target
= control target key end

     0   :  { %s1743_s15 = smov 0   ;;  %s1745_s16 = smov 0   ;;  %s2221_s0 = inlined_call_operand.vmem [shape: f32[2,16,16,4], index: 0, kind: input, shape index: {}]   ;;  %s2222_s1 = inlined_call_operand.vmem [shape: f32[2,1,16,4], index: 1, kind: input, shape index: {}]   ;;  %s2223_s2 = inlined_call_operand.vmem [shape: f32[4,4,32], index: 2, kind: input, shape index: {}]   ;;  %s2224_s3 = inlined_call_operand.vmem [shape: f32[1,32], index: 3, kind: input, shape index: {}]   ;;  %s2225_s4 = inlined_call_operand.vmem [shape: f32[2,16,2,16,16], index: 4, kind: output, shape index: {}]  }
   0x1   :  { %s1747_s17 = smov 0  }
   0x2 LB: > { %s26_s18 = sadd.s32 1, %s1711_s16  ;;  %p1488_p0 = scmp.ge.s32.totalorder %s1715_s17, 1  ;;  %s1715_s17 = sphi %s1747_s17, %s14_s17   ;;  %s1711_s16 = sphi %s1745_s16, %s2227_s16   ;;  %s1707_s15 = sphi %s1743_s15, %s2226_s15  }
   0x3   : > { %p28_p1 = scmp.ge.s32.totalorder %s26_s18, 2  ;;  %p200_p2 = scmp.lt.s32.totalorder %s1715_s17, 3 }
   0x5   : > { %s2229_s18 = smov (%p28_p1, %s26_s18), 0  ;;  %p201_p3 = pnand %p1488_p0, %p200_p2 }
   0x6   : > { %p246_p4 = scmp.lt.s32.totalorder (!%p201_p3), %s1707_s15, 1  ;;  %s1717_s11 = smov (!%p201_p3), 112  }
   0x7   : > { %204 = sbr.rel (%p201_p3) target bundleno = 519 (0x207), region = 36 }
   0xc   : > { %vm531_vm0 = vcmask 1043456   ;;  %v1562_v0 = vld [vmem:[%s2223_s2 + $0x8] sm:$0xf]  ;;  %v1596_v1 = vld [vmem:[%s2223_s2 + $0xc] sm:$0xf]  ;;  %s2231_s15 = smov (!%p246_p4, %s1707_s15), 1 }
   0xd   : > { %1563 = vmatpush.msk.msra.mxu2 %vm531_vm0, %v1562_v0  ;;  %v1495_v2 = vld [vmem:[%s2223_s2 + $0x4] sm:$0xf]  ;;  %v447_v3 = vld [vmem:[%s2223_s2] sm:$0xf]  ;;  %1597 = vmatpush.msk.msra.mxu3 %vm531_vm0, %v1596_v1  ;;  %s1664_s27 = sshll.u32 %s2231_s15, 8  ;;  %vm450_vm1 = vcmask 31744  }
   0xe   : > { %1496 = vmatpush.msk.msra.mxu0 %vm531_vm0, %v1495_v2  ;;  %1529 = vmatpush.msk.msra.mxu1 %vm531_vm0, %v447_v3  ;;  %s1779_s30 = scalar_lea.vmem %s2221_s0, %s1664_s27  ;;  %vm342_vm2 = vcmask 1046528   ;;  %s1666_s5 = sshll.u32 %s2231_s15, 9  ;;  %vm1173_vm3 = vcmask 130048  }
   0xf   : > { %v278_v4 = vld [vmem:[%s1779_s30 + $0x10] sm:$0xff]  ;;  %v279_v5 = vld [vmem:[%s1779_s30 + $0x18] sm:$0xff]  ;;  %v276_v6 = vld [vmem:[%s1779_s30] sm:$0xff]  ;;  %s1897_s10 = scalar_lea.vmem %s2225_s4, %s1666_s5  ;;  %s1665_s12 = sshll.u32 %s2231_s15, 4 }
  0x10   : > { %v346_v7 = vrot.slane %v278_v4, 1  ;;  %1564 = vmatmul.msk.f32.vlgmr.msra.gmra.mxu2 %vm450_vm1, %v278_v4  ;;  %v347_v8 = vrot.slane %v279_v5, 1  ;;  %v277_v9 = vld [vmem:[%s1779_s30 + $0x8] sm:$0xff]  ;;  %v343_v10 = vrot.slane %v276_v6, 1  ;;  %1530 = vmatmul.msk.f32.vlgmr.msra.gmra.mxu1 %vm450_vm1, %v276_v6  ;;  %v280_v16 = vld [vmem:[%s1779_s30 + $0x20] sm:$0xff]  ;;  %v282_v22 = vld [vmem:[%s1779_s30 + $0x30] sm:$0xff]  ;;  %s264_s19 = scalar_lea.vmem %s2222_s1, %s1665_s12 }
  0x11   : > { %v344_v11 = vrot.slane %v277_v9, 1  ;;  %v281_v17 = vld [vmem:[%s1779_s30 + $0x28] sm:$0xff]  ;;  %v349_v18 = vrot.slane %v280_v16, 1  ;;  %v283_v23 = vld [vmem:[%s1779_s30 + $0x38] sm:$0xff]  ;;  %v352_v24 = vrot.slane %v282_v22, 1  ;;  %v284_v28 = vld [vmem:[%s1779_s30 + $0x40] sm:$0xff] }
  0x12   : > { %v348_v12 = vsel %vm342_vm2, %v346_v7, %v347_v8  ;;  %v424_v14 = vsel %vm342_vm2, %v347_v8, %v346_v7  ;;  %v350_v19 = vrot.slane %v281_v17, 1  ;;  %v353_v25 = vrot.slane %v283_v23, 1  ;;  %v285_v29 = vld [vmem:[%s1779_s30 + $0x48] sm:$0xff]  ;;  %v286_v34 = vld [vmem:[%s1779_s30 + $0x50] sm:$0xff]  ;;  %v287_v35 = vld [vmem:[%s1779_s30 + $0x58] sm:$0xff] }
  0x13   : > { %1598 = vmatmul.msk.f32.vlgmr.msra.gmra.mxu3 %vm450_vm1, %v348_v12  ;;  %v345_v13 = vsel %vm342_vm2, %v343_v10, %v344_v11  ;;  %v423_v15 = vsel %vm342_vm2, %v344_v11, %v343_v10  ;;  %v355_v30 = vrot.slane %v284_v28, 1  ;;  %v356_v31 = vrot.slane %v285_v29, 1  ;;  %v288_v40 = vld [vmem:[%s1779_s30 + $0x60] sm:$0xff]  ;;  %v289_v41 = vld [vmem:[%s1779_s30 + $0x68] sm:$0xff]  ;;  %v290_v46 = vld [vmem:[%s1779_s30 + $0x70] sm:$0xff] }
  0x14   : > { %1497 = vmatmul.msk.f32.vlgmr.msra.gmra.mxu0 %vm450_vm1, %v345_v13  ;;  %v351_v20 = vsel %vm342_vm2, %v349_v18, %v350_v19  ;;  %v425_v21 = vsel %vm342_vm2, %v350_v19, %v349_v18  ;;  %v354_v26 = vsel %vm342_vm2, %v352_v24, %v353_v25  ;;  %v426_v27 = vsel %vm342_vm2, %v353_v25, %v352_v24  ;;  %v291_v47 = vld [vmem:[%s1779_s30 + $0x78] sm:$0xff]  ;;  %v292_v52 = vld [vmem:[%s1779_s30 + $0x80] sm:$0xff]  ;;  %v293_v53 = vld [vmem:[%s1779_s30 + $0x88] sm:$0xff] }
  0x15   : > { %v357_v32 = vsel %vm342_vm2, %v355_v30, %v356_v31  ;;  %v427_v33 = vsel %vm342_vm2, %v356_v31, %v355_v30  ;;  %v358_v36 = vrot.slane %v286_v34, 1  ;;  %v359_v37 = vrot.slane %v287_v35, 1  ;;  %v294_v58 = vld [vmem:[%s1779_s30 + $0x90] sm:$0xff]  ;;  %v295_v59 = vld [vmem:[%s1779_s30 + $0x98] sm:$0xff]  ;;  %v296_v11 = vld [vmem:[%s1779_s30 + $0xa0] sm:$0xff] }
  0x16   : > { %v361_v42 = vrot.slane %v288_v40, 1  ;;  %v362_v43 = vrot.slane %v289_v41, 1  ;;  %v364_v48 = vrot.slane %v290_v46, 1  ;;  %v365_v49 = vrot.slane %v291_v47, 1 }
  0x17   : > { %v360_v38 = vsel %vm342_vm2, %v358_v36, %v359_v37  ;;  %v428_v39 = vsel %vm342_vm2, %v359_v37, %v358_v36  ;;  %v367_v54 = vrot.slane %v292_v52, 1  ;;  %v368_v55 = vrot.slane %v293_v53, 1 }
  0x18   : > { %1565 = vmatmul.msk.f32.gmra.mxu2 %vm450_vm1, %v279_v5  ;;  %1531 = vmatmul.msk.f32.gmra.mxu1 %vm450_vm1, %v277_v9  ;;  %v363_v44 = vsel %vm342_vm2, %v361_v42, %v362_v43  ;;  %v429_v45 = vsel %vm342_vm2, %v362_v43, %v361_v42  ;;  %v366_v50 = vsel %vm342_vm2, %v364_v48, %v365_v49  ;;  %v370_v60 = vrot.slane %v294_v58, 1 }
  0x19   : > { %v430_v51 = vsel %vm342_vm2, %v365_v49, %v364_v48  ;;  %v369_v56 = vsel %vm342_vm2, %v367_v54, %v368_v55  ;;  %v431_v57 = vsel %vm342_vm2, %v368_v55, %v367_v54  ;;  %v371_v61 = vrot.slane %v295_v59, 1  ;;  %v300_v55 = vld [vmem:[%s1779_s30 + $0xc0] sm:$0xff] }
  0x1b   : > { %1599 = vmatmul.msk.f32.gmra.mxu3 %vm450_vm1, %v424_v14  ;;  %v372_v63 = vsel %vm342_vm2, %v370_v60, %v371_v61  ;;  %v432_v8 = vsel %vm342_vm2, %v371_v61, %v370_v60  ;;  %v379_v60 = vrot.slane %v300_v55, 1 }
  0x1c   : > { %1498 = vmatmul.msk.f32.gmra.mxu0 %vm450_vm1, %v423_v15 }
  0x20   : > { %1566 = vmatmul.msk.f32.gmra.mxu2 %vm450_vm1, %v280_v16  ;;  %1532 = vmatmul.msk.f32.gmra.mxu1 %vm450_vm1, %v278_v4 }
  0x23   : > { %1600 = vmatmul.msk.f32.gmra.mxu3 %vm450_vm1, %v351_v20 }
  0x24   : > { %1499 = vmatmul.msk.f32.gmra.mxu0 %vm450_vm1, %v348_v12  ;;  %v1905_v12 = vld [vmem:[%s1779_s30 + $0xa8] sm:$0xff] }
  0x28   : > { %1567 = vmatmul.msk.f32.gmra.mxu2 %vm450_vm1, %v281_v17  ;;  %1533 = vmatmul.msk.f32.gmra.mxu1 %vm450_vm1, %v279_v5  ;;  %v1892_v5 = vld [vmem:[%s2224_s3] ss:$0 sm:$0xff] }
  0x2b   : > { %1601 = vmatmul.msk.f32.gmra.mxu3 %vm450_vm1, %v425_v21 }
  0x2c   : > { %1500 = vmatmul.msk.f32.gmra.mxu0 %vm450_vm1, %v424_v14 }
  0x30   : > { %1568 = vmatmul.msk.f32.gmra.mxu2 %vm450_vm1, %v282_v22  ;;  %1534 = vmatmul.msk.f32.gmra.mxu1 %vm450_vm1, %v280_v16  ;;  %v373_v16 = vrot.slane %v296_v11, 1 }
  0x33   : > { %1602 = vmatmul.msk.f32.gmra.mxu3 %vm450_vm1, %v354_v26 }
  0x34   : > { %1501 = vmatmul.msk.f32.gmra.mxu0 %vm450_vm1, %v351_v20 }
  0x38   : > { %1569 = vmatmul.msk.f32.gmra.mxu2 %vm450_vm1, %v283_v23  ;;  %1535 = vmatmul.msk.f32.gmra.mxu1 %vm450_vm1, %v281_v17  ;;  %v374_v17 = vrot.slane %v1905_v12, 1 }
  0x3a   : > { %v433_v30 = vsel %vm342_vm2, %v374_v17, %v373_v16 }
  0x3b   : > { %1603 = vmatmul.msk.f32.gmra.mxu3 %vm450_vm1, %v426_v27 }
  0x3c   : > { %1502 = vmatmul.msk.f32.gmra.mxu0 %vm450_vm1, %v425_v21  ;;  %v375_v21 = vsel %vm342_vm2, %v373_v16, %v374_v17 }
  0x40   : > { %1570 = vmatmul.msk.f32.gmra.mxu2 %vm450_vm1, %v284_v28  ;;  %1536 = vmatmul.msk.f32.gmra.mxu1 %vm450_vm1, %v282_v22 }
  0x43   : > { %1604 = vmatmul.msk.f32.gmra.mxu3 %vm450_vm1, %v357_v32 }
  0x44   : > { %1503 = vmatmul.msk.f32.gmra.mxu0 %vm450_vm1, %v354_v26 }
  0x48   : > { %1571 = vmatmul.msk.f32.gmra.mxu2 %vm450_vm1, %v285_v29  ;;  %1537 = vmatmul.msk.f32.gmra.mxu1 %vm450_vm1, %v283_v23 }
  0x4b   : > { %1605 = vmatmul.msk.f32.gmra.mxu3 %vm450_vm1, %v427_v33 }
  0x4c   : > { %1504 = vmatmul.msk.f32.gmra.mxu0 %vm450_vm1, %v426_v27 }
  0x50   : > { %1572 = vmatmul.msk.f32.gmra.mxu2 %vm450_vm1, %v286_v34  ;;  %1538 = vmatmul.msk.f32.gmra.mxu1 %vm450_vm1, %v284_v28 }
  0x53   : > { %1606 = vmatmul.msk.f32.gmra.mxu3 %vm450_vm1, %v360_v38 }
  0x54   : > { %1505 = vmatmul.msk.f32.gmra.mxu0 %vm450_vm1, %v357_v32 }
  0x58   : > { %1573 = vmatmul.msk.f32.gmra.mxu2 %vm450_vm1, %v287_v35  ;;  %1539 = vmatmul.msk.f32.gmra.mxu1 %vm450_vm1, %v285_v29 }
  0x5b   : > { %1607 = vmatmul.msk.f32.gmra.mxu3 %vm450_vm1, %v428_v39 }
  0x5c   : > { %1506 = vmatmul.msk.f32.gmra.mxu0 %vm450_vm1, %v427_v33  ;;  %v298_v33 = vld [vmem:[%s1779_s30 + $0xb0] sm:$0xff] }
  0x60   : > { %1574 = vmatmul.msk.f32.gmra.mxu2 %vm450_vm1, %v288_v40  ;;  %1540 = vmatmul.msk.f32.gmra.mxu1 %vm450_vm1, %v286_v34  ;;  %v1929_v34 = vld [vmem:[%s1779_s30 + $0xb8] sm:$0xff] }
  0x63   : > { %1608 = vmatmul.msk.f32.gmra.mxu3 %vm450_vm1, %v363_v44 }
  0x64   : > { %1507 = vmatmul.msk.f32.gmra.mxu0 %vm450_vm1, %v360_v38  ;;  %v376_v38 = vrot.slane %v298_v33, 1 }
  0x68   : > { %1575 = vmatmul.msk.f32.gmra.mxu2 %vm450_vm1, %v289_v41  ;;  %1541 = vmatmul.msk.f32.gmra.mxu1 %vm450_vm1, %v287_v35 }
  0x6b   : > { %1609 = vmatmul.msk.f32.gmra.mxu3 %vm450_vm1, %v429_v45 }
  0x6c   : > { %1508 = vmatmul.msk.f32.gmra.mxu0 %vm450_vm1, %v428_v39  ;;  %v377_v39 = vrot.slane %v1929_v34, 1 }
  0x6e   : > { %v378_v43 = vsel %vm342_vm2, %v376_v38, %v377_v39 }
  0x70   : > { %1576 = vmatmul.msk.f32.gmra.mxu2 %vm450_vm1, %v290_v46  ;;  %1542 = vmatmul.msk.f32.gmra.mxu1 %vm450_vm1, %v288_v40 }
  0x73   : > { %1610 = vmatmul.msk.f32.gmra.mxu3 %vm450_vm1, %v366_v50 }
  0x74   : > { %1509 = vmatmul.msk.f32.gmra.mxu0 %vm450_vm1, %v363_v44 }
  0x78   : > { %1577 = vmatmul.msk.f32.gmra.mxu2 %vm450_vm1, %v291_v47  ;;  %1543 = vmatmul.msk.f32.gmra.mxu1 %vm450_vm1, %v289_v41 }
  0x7b   : > { %1611 = vmatmul.msk.f32.gmra.mxu3 %vm450_vm1, %v430_v51 }
  0x7c   : > { %1510 = vmatmul.msk.f32.gmra.mxu0 %vm450_vm1, %v429_v45 }
  0x80   : > { %1578 = vmatmul.msk.f32.gmra.mxu2 %vm450_vm1, %v292_v52  ;;  %1544 = vmatmul.msk.f32.gmra.mxu1 %vm450_vm1, %v290_v46 }
  0x83   : > { %1612 = vmatmul.msk.f32.gmra.mxu3 %vm450_vm1, %v369_v56 }
  0x84   : > { %1511 = vmatmul.msk.f32.gmra.mxu0 %vm450_vm1, %v366_v50 }
  0x88   : > { %1579 = vmatmul.msk.f32.gmra.mxu2 %vm450_vm1, %v293_v53  ;;  %1545 = vmatmul.msk.f32.gmra.mxu1 %vm450_vm1, %v291_v47 }
  0x8b   : > { %1613 = vmatmul.msk.f32.gmra.mxu3 %vm450_vm1, %v431_v57 }
  0x8c   : > { %1512 = vmatmul.msk.f32.gmra.mxu0 %vm450_vm1, %v430_v51 }
  0x8d   : > { %v732_v62 = vpop.f32.mrf.mxu1 }
  0x90   : > { %1580 = vmatmul.msk.f32.gmra.mxu2 %vm450_vm1, %v294_v58  ;;  %1546 = vmatmul.msk.f32.gmra.mxu1 %vm450_vm1, %v292_v52  ;;  %v434_v52 = vsel %vm342_vm2, %v377_v39, %v376_v38 }
  0x91   : > { %v552_v0 = vpop.f32.mrf.mxu0 }
  0x92   : > { %v733_v1 = vadd.f32 %v732_v62, %v552_v0 }
  0x93   : > { %1614 = vmatmul.msk.f32.gmra.mxu3 %vm450_vm1, %v372_v63  ;;  %v854_v2 = vpop.f32.mrf.mxu2 }
  0x94   : > { %v950_v3 = vadd.f32 %v854_v2, %v733_v1  ;;  %1513 = vmatmul.msk.f32.gmra.mxu0 %vm450_vm1, %v369_v56  ;;  %v1954_v56 = vld [vmem:[%s1779_s30 + $0xc8] sm:$0xff] }
  0x95   : > { %v735_v4 = vpop.f32.mrf.mxu1  ;;  %v380_v61 = vrot.slane %v1954_v56, 1 }
  0x96   : > { %v1009_v6 = vpop.f32.mrf.mxu3 }
  0x97   : > { %v1105_v7 = vadd.f32 %v1009_v6, %v950_v3  ;;  %v381_v1 = vsel %vm342_vm2, %v379_v60, %v380_v61 }
  0x98   : > { %1581 = vmatmul.msk.f32.gmra.mxu2 %vm450_vm1, %v295_v59  ;;  %1547 = vmatmul.msk.f32.gmra.mxu1 %vm450_vm1, %v293_v53 }
  0x99   : > { %v555_v9 = vpop.f32.mrf.mxu0  ;;  %v1141_v10 = vadd.f32 %v1892_v5, %v1105_v7 }
  0x9a   : > { %v736_v13 = vadd.f32 %v735_v4, %v555_v9 }
  0x9b   : > { %1615 = vmatmul.msk.f32.gmra.mxu3 %vm450_vm1, %v432_v8  ;;  %1238 = vrot.lane.b32.xlu0 %v1141_v10, %s1717_s11  ;;  %1174 = vst.msk [vmem:[%s1897_s10] sm:$0xff] %vm1173_vm3, %v1141_v10  ;;  %v857_v14 = vpop.f32.mrf.mxu2 }
  0x9c   : > { %v951_v15 = vadd.f32 %v857_v14, %v736_v13  ;;  %1514 = vmatmul.msk.f32.gmra.mxu0 %vm450_vm1, %v431_v57  ;;  %v302_v14 = vld [vmem:[%s1779_s30 + $0xd0] sm:$0xff] }
  0x9d   : > { %v738_v18 = vpop.f32.mrf.mxu1 }
  0x9e   : > { %v1012_v19 = vpop.f32.mrf.mxu3 }
  0x9f   : > { %v1106_v20 = vadd.f32 %v1012_v19, %v951_v15  ;;  %v1979_v15 = vld [vmem:[%s1779_s30 + $0xd8] sm:$0xff]  ;;  %v382_v19 = vrot.slane %v302_v14, 1 }
  0xa0   : > { %1582 = vmatmul.msk.f32.gmra.mxu2 %vm450_vm1, %v296_v11  ;;  %1548 = vmatmul.msk.f32.gmra.mxu1 %vm450_vm1, %v294_v58 }
  0xa1   : > { %v1142_v22 = vadd.f32 %v1892_v5, %v1106_v20  ;;  %v558_v23 = vpop.f32.mrf.mxu0  ;;  %v383_v20 = vrot.slane %v1979_v15, 1 }
  0xa2   : > { %v739_v24 = vadd.f32 %v738_v18, %v558_v23 }
  0xa3   : > { %1175 = vst.msk [vmem:[%s1897_s10 + $0x8] sm:$0xff] %vm1173_vm3, %v1142_v22  ;;  %1616 = vmatmul.msk.f32.gmra.mxu3 %vm450_vm1, %v375_v21  ;;  %1240 = vrot.lane.b32.xlu0 %v1142_v22, %s1717_s11  ;;  %v860_v25 = vpop.f32.mrf.mxu2 }
  0xa4   : > { %v952_v26 = vadd.f32 %v860_v25, %v739_v24  ;;  %1515 = vmatmul.msk.f32.gmra.mxu0 %vm450_vm1, %v372_v63  ;;  %v384_v24 = vsel %vm342_vm2, %v382_v19, %v383_v20 }
  0xa5   : > { %v741_v27 = vpop.f32.mrf.mxu1 }
  0xa6   : > { %v1015_v28 = vpop.f32.mrf.mxu3 }
  0xa7   : > { %v1107_v29 = vadd.f32 %v1015_v28, %v952_v26 }
  0xa8   : > { %1583 = vmatmul.msk.f32.gmra.mxu2 %vm450_vm1, %v1905_v12  ;;  %1549 = vmatmul.msk.f32.gmra.mxu1 %vm450_vm1, %v295_v59 }
  0xa9   : > { %v561_v31 = vpop.f32.mrf.mxu0  ;;  %v1143_v32 = vadd.f32 %v1892_v5, %v1107_v29 }
  0xaa   : > { %v742_v35 = vadd.f32 %v741_v27, %v561_v31 }
  0xab   : > { %1617 = vmatmul.msk.f32.gmra.mxu3 %vm450_vm1, %v433_v30  ;;  %1242 = vrot.lane.b32.xlu1 %v1143_v32, %s1717_s11  ;;  %1176 = vst.msk [vmem:[%s1897_s10 + $0x20] sm:$0xff] %vm1173_vm3, %v1143_v32  ;;  %v863_v36 = vpop.f32.mrf.mxu2 }
  0xac   : > { %v953_v37 = vadd.f32 %v863_v36, %v742_v35  ;;  %1516 = vmatmul.msk.f32.gmra.mxu0 %vm450_vm1, %v432_v8  ;;  %v304_v36 = vld [vmem:[%s1779_s30 + $0xe0] sm:$0xff] }
  0xad   : > { %v744_v40 = vpop.f32.mrf.mxu1 }
  0xae   : > { %v1018_v41 = vpop.f32.mrf.mxu3 }
  0xaf   : > { %v1108_v42 = vadd.f32 %v1018_v41, %v953_v37  ;;  %v2004_v37 = vld [vmem:[%s1779_s30 + $0xe8] sm:$0xff]  ;;  %v385_v41 = vrot.slane %v304_v36, 1 }
  0xb0   : > { %1584 = vmatmul.msk.f32.gmra.mxu2 %vm450_vm1, %v298_v33  ;;  %1550 = vmatmul.msk.f32.gmra.mxu1 %vm450_vm1, %v296_v11  ;;  %v435_v11 = vsel %vm342_vm2, %v380_v61, %v379_v60 }
  0xb1   : > { %v1144_v44 = vadd.f32 %v1892_v5, %v1108_v42  ;;  %v564_v45 = vpop.f32.mrf.mxu0  ;;  %v386_v42 = vrot.slane %v2004_v37, 1 }
  0xb2   : > { %v745_v46 = vadd.f32 %v744_v40, %v564_v45 }
  0xb3   : > { %1177 = vst.msk [vmem:[%s1897_s10 + $0x28] sm:$0xff] %vm1173_vm3, %v1144_v44  ;;  %1618 = vmatmul.msk.f32.gmra.mxu3 %vm450_vm1, %v378_v43  ;;  %1244 = vrot.lane.b32.xlu1 %v1144_v44, %s1717_s11  ;;  %v866_v47 = vpop.f32.mrf.mxu2 }
  0xb4   : > { %v954_v48 = vadd.f32 %v866_v47, %v745_v46  ;;  %1517 = vmatmul.msk.f32.gmra.mxu0 %vm450_vm1, %v375_v21  ;;  %v387_v46 = vsel %vm342_vm2, %v385_v41, %v386_v42 }
  0xb5   : > { %v747_v49 = vpop.f32.mrf.mxu1 }
  0xb6   : > { %v1021_v50 = vpop.f32.mrf.mxu3 }
  0xb7   : > { %v1109_v51 = vadd.f32 %v1021_v50, %v954_v48 }
  0xb8   : > { %1585 = vmatmul.msk.f32.gmra.mxu2 %vm450_vm1, %v1929_v34  ;;  %1551 = vmatmul.msk.f32.gmra.mxu1 %vm450_vm1, %v1905_v12 }
  0xb9   : > { %v567_v53 = vpop.f32.mrf.mxu0  ;;  %v1145_v54 = vadd.f32 %v1892_v5, %v1109_v51 }
  0xba   : > { %v748_v57 = vadd.f32 %v747_v49, %v567_v53 }
  0xbb   : > { %1619 = vmatmul.msk.f32.gmra.mxu3 %vm450_vm1, %v434_v52  ;;  %1246 = vrot.lane.b32.xlu2 %v1145_v54, %s1717_s11  ;;  %1178 = vst.msk [vmem:[%s1897_s10 + $0x40] sm:$0xff] %vm1173_vm3, %v1145_v54  ;;  %v869_v58 = vpop.f32.mrf.mxu2 }
  0xbc   : > { %v955_v59 = vadd.f32 %v869_v58, %v748_v57  ;;  %1518 = vmatmul.msk.f32.gmra.mxu0 %vm450_vm1, %v433_v30  ;;  %v306_v58 = vld [vmem:[%s1779_s30 + $0xf0] sm:$0xff] }
  0xbd   : > { %v750_v62 = vpop.f32.mrf.mxu1 }
  0xbe   : > { %v1024_v63 = vpop.f32.mrf.mxu3 }
  0xbf   : > { %v1110_v0 = vadd.f32 %v1024_v63, %v955_v59  ;;  %v2029_v59 = vld [vmem:[%s1779_s30 + $0xf8] sm:$0xff]  ;;  %v388_v63 = vrot.slane %v306_v58, 1 }
  0xc0   : > { %1586 = vmatmul.msk.f32.gmra.mxu2 %vm450_vm1, %v300_v55  ;;  %1552 = vmatmul.msk.f32.gmra.mxu1 %vm450_vm1, %v298_v33  ;;  %v436_v33 = vsel %vm342_vm2, %v383_v20, %v382_v19 }
  0xc1   : > { %v1146_v2 = vadd.f32 %v1892_v5, %v1110_v0  ;;  %v570_v3 = vpop.f32.mrf.mxu0  ;;  %v389_v0 = vrot.slane %v2029_v59, 1 }
  0xc2   : > { %v751_v4 = vadd.f32 %v750_v62, %v570_v3 }
  0xc3   : > { %1179 = vst.msk [vmem:[%s1897_s10 + $0x48] sm:$0xff] %vm1173_vm3, %v1146_v2  ;;  %1620 = vmatmul.msk.f32.gmra.mxu3 %vm450_vm1, %v381_v1  ;;  %1248 = vrot.lane.b32.xlu2 %v1146_v2, %s1717_s11  ;;  %v872_v6 = vpop.f32.mrf.mxu2 }
  0xc4   : > { %v956_v7 = vadd.f32 %v872_v6, %v751_v4  ;;  %1519 = vmatmul.msk.f32.gmra.mxu0 %vm450_vm1, %v378_v43  ;;  %v390_v4 = vsel %vm342_vm2, %v388_v63, %v389_v0 }
  0xc5   : > { %v753_v8 = vpop.f32.mrf.mxu1 }
  0xc6   : > { %v1027_v9 = vpop.f32.mrf.mxu3 }
  0xc7   : > { %v1111_v10 = vadd.f32 %v1027_v9, %v956_v7 }
  0xc8   : > { %1587 = vmatmul.msk.f32.gmra.mxu2 %vm450_vm1, %v1954_v56  ;;  %1553 = vmatmul.msk.f32.gmra.mxu1 %vm450_vm1, %v1929_v34 }
  0xc9   : > { %v1147_v12 = vadd.f32 %v1892_v5, %v1111_v10  ;;  %v573_v13 = vpop.f32.mrf.mxu0 }
  0xca   : > { %v754_v16 = vadd.f32 %v753_v8, %v573_v13 }
  0xcb   : > { %1180 = vst.msk [vmem:[%s1897_s10 + $0x60] sm:$0xff] %vm1173_vm3, %v1147_v12  ;;  %1621 = vmatmul.msk.f32.gmra.mxu3 %vm450_vm1, %v435_v11  ;;  %1250 = vrot.lane.b32.xlu0 %v1147_v12, %s1717_s11  ;;  %v875_v17 = vpop.f32.mrf.mxu2 }
  0xcc   : > { %v957_v18 = vadd.f32 %v875_v17, %v754_v16  ;;  %1520 = vmatmul.msk.f32.gmra.mxu0 %vm450_vm1, %v434_v52  ;;  %v308_v17 = vld [vmem:[%s264_s19] sm:$0xff] }
  0xcd   : > { %v756_v21 = vpop.f32.mrf.mxu1 }
  0xce   : > { %v1030_v22 = vpop.f32.mrf.mxu3 }
  0xcf   : > { %v1112_v23 = vadd.f32 %v1030_v22, %v957_v18  ;;  %v309_v18 = vld [vmem:[%s264_s19 + $0x8] sm:$0xff]  ;;  %v441_v22 = vrot.slane %v308_v17, 1 }
  0xd0   : > { %1588 = vmatmul.msk.f32.gmra.mxu2 %vm450_vm1, %v302_v14  ;;  %1554 = vmatmul.msk.f32.gmra.mxu1 %vm450_vm1, %v300_v55  ;;  %v437_v55 = vsel %vm342_vm2, %v386_v42, %v385_v41 }
  0xd1   : > { %v1148_v25 = vadd.f32 %v1892_v5, %v1112_v23  ;;  %v576_v26 = vpop.f32.mrf.mxu0  ;;  %v442_v23 = vrot.slane %v309_v18, 1 }
  0xd2   : > { %v757_v27 = vadd.f32 %v756_v21, %v576_v26 }
  0xd3   : > { %1181 = vst.msk [vmem:[%s1897_s10 + $0x68] sm:$0xff] %vm1173_vm3, %v1148_v25  ;;  %1622 = vmatmul.msk.f32.gmra.mxu3 %vm450_vm1, %v384_v24  ;;  %1252 = vrot.lane.b32.xlu1 %v1148_v25, %s1717_s11  ;;  %v878_v28 = vpop.f32.mrf.mxu2 }
  0xd4   : > { %v958_v29 = vadd.f32 %v878_v28, %v757_v27  ;;  %1521 = vmatmul.msk.f32.gmra.mxu0 %vm450_vm1, %v381_v1  ;;  %v443_v27 = vsel %vm342_vm2, %v441_v22, %v442_v23 }
  0xd5   : > { %v759_v30 = vpop.f32.mrf.mxu1 }
  0xd6   : > { %v1033_v31 = vpop.f32.mrf.mxu3 }
  0xd7   : > { %v1113_v32 = vadd.f32 %v1033_v31, %v958_v29 }
  0xd8   : > { %1589 = vmatmul.msk.f32.gmra.mxu2 %vm450_vm1, %v1979_v15  ;;  %1555 = vmatmul.msk.f32.gmra.mxu1 %vm450_vm1, %v1954_v56 }
  0xd9   : > { %v1149_v34 = vadd.f32 %v1892_v5, %v1113_v32  ;;  %v579_v35 = vpop.f32.mrf.mxu0 }
  0xda   : > { %v760_v38 = vadd.f32 %v759_v30, %v579_v35 }
  0xdb   : > { %1182 = vst.msk [vmem:[%s1897_s10 + $0x80] sm:$0xff] %vm1173_vm3, %v1149_v34  ;;  %1623 = vmatmul.msk.f32.gmra.mxu3 %vm450_vm1, %v436_v33  ;;  %1254 = vrot.lane.b32.xlu2 %v1149_v34, %s1717_s11  ;;  %v881_v39 = vpop.f32.mrf.mxu2 }
  0xdc   : > { %v959_v40 = vadd.f32 %v881_v39, %v760_v38  ;;  %1522 = vmatmul.msk.f32.gmra.mxu0 %vm450_vm1, %v435_v11 }
  0xdd   : > { %v762_v43 = vpop.f32.mrf.mxu1 }
  0xde   : > { %v1036_v44 = vpop.f32.mrf.mxu3 }
  0xdf   : > { %v1114_v45 = vadd.f32 %v1036_v44, %v959_v40 }
  0xe0   : > { %1590 = vmatmul.msk.f32.gmra.mxu2 %vm450_vm1, %v304_v36  ;;  %1556 = vmatmul.msk.f32.gmra.mxu1 %vm450_vm1, %v302_v14  ;;  %v438_v14 = vsel %vm342_vm2, %v389_v0, %v388_v63 }
  0xe1   : > { %v1150_v47 = vadd.f32 %v1892_v5, %v1114_v45  ;;  %v582_v48 = vpop.f32.mrf.mxu0 }
  0xe2   : > { %v763_v49 = vadd.f32 %v762_v43, %v582_v48 }
  0xe3   : > { %1183 = vst.msk [vmem:[%s1897_s10 + $0x88] sm:$0xff] %vm1173_vm3, %v1150_v47  ;;  %1624 = vmatmul.msk.f32.gmra.mxu3 %vm450_vm1, %v387_v46  ;;  %1256 = vrot.lane.b32.xlu0 %v1150_v47, %s1717_s11  ;;  %v884_v50 = vpop.f32.mrf.mxu2 }
  0xe4   : > { %v960_v51 = vadd.f32 %v884_v50, %v763_v49  ;;  %1523 = vmatmul.msk.f32.gmra.mxu0 %vm450_vm1, %v384_v24 }
  0xe5   : > { %v765_v52 = vpop.f32.mrf.mxu1 }
  0xe6   : > { %v1039_v53 = vpop.f32.mrf.mxu3 }
  0xe7   : > { %v1115_v54 = vadd.f32 %v1039_v53, %v960_v51 }
  0xe8   : > { %1591 = vmatmul.msk.f32.gmra.mxu2 %vm450_vm1, %v2004_v37  ;;  %1557 = vmatmul.msk.f32.gmra.mxu1 %vm450_vm1, %v1979_v15 }
  0xe9   : > { %v1151_v56 = vadd.f32 %v1892_v5, %v1115_v54  ;;  %v585_v57 = vpop.f32.mrf.mxu0 }
  0xea   : > { %v766_v60 = vadd.f32 %v765_v52, %v585_v57 }
  0xeb   : > { %1184 = vst.msk [vmem:[%s1897_s10 + $0xa0] sm:$0xff] %vm1173_vm3, %v1151_v56  ;;  %1625 = vmatmul.msk.f32.gmra.mxu3 %vm450_vm1, %v437_v55  ;;  %1258 = vrot.lane.b32.xlu1 %v1151_v56, %s1717_s11  ;;  %v887_v61 = vpop.f32.mrf.mxu2 }
  0xec   : > { %v961_v62 = vadd.f32 %v887_v61, %v766_v60  ;;  %1524 = vmatmul.msk.f32.gmra.mxu0 %vm450_vm1, %v436_v33 }
  0xed   : > { %v768_v1 = vpop.f32.mrf.mxu1 }
  0xee   : > { %v1042_v2 = vpop.f32.mrf.mxu3 }
  0xef   : > { %v1116_v3 = vadd.f32 %v1042_v2, %v961_v62 }
  0xf0   : > { %1592 = vmatmul.msk.f32.gmra.mxu2 %vm450_vm1, %v306_v58  ;;  %1558 = vmatmul.msk.f32.gmra.mxu1 %vm450_vm1, %v304_v36  ;;  %v446_v36 = vsel %vm342_vm2, %v442_v23, %v441_v22 }
  0xf1   : > { %v1152_v6 = vadd.f32 %v1892_v5, %v1116_v3  ;;  %v588_v7 = vpop.f32.mrf.mxu0 }
  0xf2   : > { %v769_v8 = vadd.f32 %v768_v1, %v588_v7 }
  0xf3   : > { %1185 = vst.msk [vmem:[%s1897_s10 + $0xa8] sm:$0xff] %vm1173_vm3, %v1152_v6  ;;  %1626 = vmatmul.msk.f32.gmra.mxu3 %vm450_vm1, %v390_v4  ;;  %1260 = vrot.lane.b32.xlu2 %v1152_v6, %s1717_s11  ;;  %v890_v9 = vpop.f32.mrf.mxu2 }
  0xf4   : > { %v962_v10 = vadd.f32 %v890_v9, %v769_v8  ;;  %1525 = vmatmul.msk.f32.gmra.mxu0 %vm450_vm1, %v387_v46 }
  0xf5   : > { %v771_v11 = vpop.f32.mrf.mxu1 }
  0xf6   : > { %v1045_v12 = vpop.f32.mrf.mxu3 }
  0xf7   : > { %v1117_v13 = vadd.f32 %v1045_v12, %v962_v10 }
  0xf8   : > { %1593 = vmatmul.msk.f32.gmra.mxu2 %vm450_vm1, %v2029_v59  ;;  %1559 = vmatmul.msk.f32.gmra.mxu1 %vm450_vm1, %v2004_v37 }
  0xf9   : > { %v1153_v15 = vadd.f32 %v1892_v5, %v1117_v13  ;;  %v591_v16 = vpop.f32.mrf.mxu0 }
  0xfa   : > { %v772_v19 = vadd.f32 %v771_v11, %v591_v16 }
  0xfb   : > { %1186 = vst.msk [vmem:[%s1897_s10 + $0xc0] sm:$0xff] %vm1173_vm3, %v1153_v15  ;;  %1627 = vmatmul.msk.f32.gmra.mxu3 %vm450_vm1, %v438_v14  ;;  %1262 = vrot.lane.b32.xlu0 %v1153_v15, %s1717_s11  ;;  %v893_v20 = vpop.f32.mrf.mxu2 }
  0xfc   : > { %v963_v21 = vadd.f32 %v893_v20, %v772_v19  ;;  %1526 = vmatmul.msk.f32.gmra.mxu0 %vm450_vm1, %v437_v55 }
  0xfd   : > { %v774_v24 = vpop.f32.mrf.mxu1 }
  0xfe   : > { %v1048_v25 = vpop.f32.mrf.mxu3 }
  0xff   : > { %v1118_v26 = vadd.f32 %v1048_v25, %v963_v21 }
 0x100   : > { %1594 = vmatmul.msk.f32.gmra.mxu2 %vm450_vm1, %v308_v17  ;;  %1560 = vmatmul.msk.f32.gmra.mxu1 %vm450_vm1, %v306_v58 }
 0x101   : > { %v1154_v28 = vadd.f32 %v1892_v5, %v1118_v26  ;;  %v594_v29 = vpop.f32.mrf.mxu0 }
 0x102   : > { %v775_v30 = vadd.f32 %v774_v24, %v594_v29 }
 0x103   : > { %1187 = vst.msk [vmem:[%s1897_s10 + $0xc8] sm:$0xff] %vm1173_vm3, %v1154_v28  ;;  %1628 = vmatmul.msk.f32.gmra.mxu3 %vm450_vm1, %v443_v27  ;;  %1264 = vrot.lane.b32.xlu1 %v1154_v28, %s1717_s11  ;;  %v896_v31 = vpop.f32.mrf.mxu2 }
 0x104   : > { %v964_v32 = vadd.f32 %v896_v31, %v775_v30  ;;  %1527 = vmatmul.msk.f32.gmra.mxu0 %vm450_vm1, %v390_v4 }
 0x105   : > { %v777_v33 = vpop.f32.mrf.mxu1 }
 0x106   : > { %v1051_v34 = vpop.f32.mrf.mxu3 }
 0x107   : > { %v1119_v35 = vadd.f32 %v1051_v34, %v964_v32 }
 0x108   : > { %1595 = vmatmul.msk.f32.gmra.mxu2 %vm450_vm1, %v309_v18  ;;  %1561 = vmatmul.msk.f32.gmra.mxu1 %vm450_vm1, %v2029_v59 }
 0x109   : > { %v1155_v37 = vadd.f32 %v1892_v5, %v1119_v35  ;;  %v597_v38 = vpop.f32.mrf.mxu0 }
 0x10a   : > { %v778_v39 = vadd.f32 %v777_v33, %v597_v38 }
 0x10b   : > { %1188 = vst.msk [vmem:[%s1897_s10 + $0xe0] sm:$0xff] %vm1173_vm3, %v1155_v37  ;;  %1629 = vmatmul.msk.f32.gmra.mxu3 %vm450_vm1, %v446_v36  ;;  %1266 = vrot.lane.b32.xlu2 %v1155_v37, %s1717_s11  ;;  %v899_v40 = vpop.f32.mrf.mxu2 }
 0x10c   : > { %v965_v41 = vadd.f32 %v899_v40, %v778_v39  ;;  %1528 = vmatmul.msk.f32.gmra.mxu0 %vm450_vm1, %v438_v14 }
 0x10d   : > { %v1239_v42 = vpop.permute.xlu0 %1238  ;;  %v780_v43 = vpop.f32.mrf.mxu1 }
 0x10e   : > { %1630 = vst.msk [vmem:[%s1897_s10 + $0x10] sm:$0xff] %vm1173_vm3, %v1239_v42  ;;  %v1054_v44 = vpop.f32.mrf.mxu3 }
 0x10f   : > { %v1120_v45 = vadd.f32 %v1054_v44, %v965_v41 }
 0x111   : > { %v1156_v46 = vadd.f32 %v1892_v5, %v1120_v45  ;;  %v600_v47 = vpop.f32.mrf.mxu0 }
 0x112   : > { %v781_v48 = vadd.f32 %v780_v43, %v600_v47 }
 0x113   : > { %1189 = vst.msk [vmem:[%s1897_s10 + $0xe8] sm:$0xff] %vm1173_vm3, %v1156_v46  ;;  %1268 = vrot.lane.b32.xlu0 %v1156_v46, %s1717_s11  ;;  %v902_v49 = vpop.f32.mrf.mxu2 }
 0x114   : > { %v966_v50 = vadd.f32 %v902_v49, %v781_v48 }
 0x115   : > { %v1241_v51 = vpop.permute.xlu0 %1240  ;;  %v1247_v52 = vpop.permute.xlu2 %1246 }
 0x116   : > { %1631 = vst.msk [vmem:[%s1897_s10 + $0x18] sm:$0xff] %vm1173_vm3, %v1241_v51  ;;  %v1057_v53 = vpop.f32.mrf.mxu3  ;;  %v783_v54 = vpop.f32.mrf.mxu1 }
 0x117   : > { %1634 = vst.msk [vmem:[%s1897_s10 + $0x50] sm:$0xff] %vm1173_vm3, %v1247_v52  ;;  %v1121_v55 = vadd.f32 %v1057_v53, %v966_v50 }
 0x119   : > { %v1157_v56 = vadd.f32 %v1892_v5, %v1121_v55  ;;  %v603_v57 = vpop.f32.mrf.mxu0 }
 0x11a   : > { %v784_v58 = vadd.f32 %v783_v54, %v603_v57 }
 0x11b   : > { %1190 = vst.msk [vmem:[%s1897_s10 + $0x100] sm:$0xff] %vm1173_vm3, %v1157_v56  ;;  %1270 = vrot.lane.b32.xlu1 %v1157_v56, %s1717_s11  ;;  %v905_v59 = vpop.f32.mrf.mxu2 }
 0x11c   : > { %v967_v60 = vadd.f32 %v905_v59, %v784_v58 }
 0x11d   : > { %v1243_v61 = vpop.permute.xlu1 %1242  ;;  %v1249_v62 = vpop.permute.xlu2 %1248 }
 0x11e   : > { %1632 = vst.msk [vmem:[%s1897_s10 + $0x30] sm:$0xff] %vm1173_vm3, %v1243_v61  ;;  %v1060_v63 = vpop.f32.mrf.mxu3  ;;  %v786_v0 = vpop.f32.mrf.mxu1 }
 0x11f   : > { %1635 = vst.msk [vmem:[%s1897_s10 + $0x58] sm:$0xff] %vm1173_vm3, %v1249_v62  ;;  %v1122_v1 = vadd.f32 %v1060_v63, %v967_v60 }
 0x121   : > { %v1158_v2 = vadd.f32 %v1892_v5, %v1122_v1  ;;  %v606_v3 = vpop.f32.mrf.mxu0 }
 0x122   : > { %v787_v4 = vadd.f32 %v786_v0, %v606_v3 }
 0x123   : > { %1191 = vst.msk [vmem:[%s1897_s10 + $0x108] sm:$0xff] %vm1173_vm3, %v1158_v2  ;;  %1272 = vrot.lane.b32.xlu2 %v1158_v2, %s1717_s11  ;;  %v908_v6 = vpop.f32.mrf.mxu2 }
 0x124   : > { %v968_v7 = vadd.f32 %v908_v6, %v787_v4 }
 0x125   : > { %v1245_v8 = vpop.permute.xlu1 %1244 }
 0x126   : > { %1633 = vst.msk [vmem:[%s1897_s10 + $0x38] sm:$0xff] %vm1173_vm3, %v1245_v8  ;;  %v1063_v9 = vpop.f32.mrf.mxu3  ;;  %v789_v10 = vpop.f32.mrf.mxu1 }
 0x127   : > { %v1123_v11 = vadd.f32 %v1063_v9, %v968_v7 }
 0x129   : > { %v1159_v12 = vadd.f32 %v1892_v5, %v1123_v11  ;;  %v609_v13 = vpop.f32.mrf.mxu0 }
 0x12a   : > { %v790_v14 = vadd.f32 %v789_v10, %v609_v13 }
 0x12b   : > { %1192 = vst.msk [vmem:[%s1897_s10 + $0x120] sm:$0xff] %vm1173_vm3, %v1159_v12  ;;  %1274 = vrot.lane.b32.xlu0 %v1159_v12, %s1717_s11  ;;  %v911_v15 = vpop.f32.mrf.mxu2 }
 0x12c   : > { %v969_v16 = vadd.f32 %v911_v15, %v790_v14 }
 0x12e   : > { %v1066_v17 = vpop.f32.mrf.mxu3  ;;  %v792_v18 = vpop.f32.mrf.mxu1 }
 0x12f   : > { %v1124_v19 = vadd.f32 %v1066_v17, %v969_v16 }
 0x131   : > { %v1160_v20 = vadd.f32 %v1892_v5, %v1124_v19  ;;  %v612_v21 = vpop.f32.mrf.mxu0 }
 0x132   : > { %v793_v22 = vadd.f32 %v792_v18, %v612_v21 }
 0x133   : > { %1193 = vst.msk [vmem:[%s1897_s10 + $0x128] sm:$0xff] %vm1173_vm3, %v1160_v20  ;;  %1276 = vrot.lane.b32.xlu1 %v1160_v20, %s1717_s11  ;;  %v914_v23 = vpop.f32.mrf.mxu2 }
 0x134   : > { %v970_v24 = vadd.f32 %v914_v23, %v793_v22 }
 0x135   : > { %v1255_v25 = vpop.permute.xlu2 %1254 }
 0x136   : > { %1638 = vst.msk [vmem:[%s1897_s10 + $0x90] sm:$0xff] %vm1173_vm3, %v1255_v25  ;;  %v1069_v26 = vpop.f32.mrf.mxu3  ;;  %v795_v27 = vpop.f32.mrf.mxu1 }
 0x137   : > { %v1125_v28 = vadd.f32 %v1069_v26, %v970_v24 }
 0x139   : > { %v1161_v29 = vadd.f32 %v1892_v5, %v1125_v28  ;;  %v615_v30 = vpop.f32.mrf.mxu0 }
 0x13a   : > { %v796_v31 = vadd.f32 %v795_v27, %v615_v30 }
 0x13b   : > { %1194 = vst.msk [vmem:[%s1897_s10 + $0x140] sm:$0xff] %vm1173_vm3, %v1161_v29  ;;  %1278 = vrot.lane.b32.xlu2 %v1161_v29, %s1717_s11  ;;  %v917_v32 = vpop.f32.mrf.mxu2 }
 0x13c   : > { %v971_v33 = vadd.f32 %v917_v32, %v796_v31 }
 0x13d   : > { %v1251_v34 = vpop.permute.xlu0 %1250 }
 0x13e   : > { %1636 = vst.msk [vmem:[%s1897_s10 + $0x70] sm:$0xff] %vm1173_vm3, %v1251_v34  ;;  %v1072_v35 = vpop.f32.mrf.mxu3  ;;  %v798_v36 = vpop.f32.mrf.mxu1 }
 0x13f   : > { %v1126_v37 = vadd.f32 %v1072_v35, %v971_v33 }
 0x141   : > { %v1162_v38 = vadd.f32 %v1892_v5, %v1126_v37  ;;  %v618_v39 = vpop.f32.mrf.mxu0 }
 0x142   : > { %v799_v40 = vadd.f32 %v798_v36, %v618_v39 }
 0x143   : > { %1195 = vst.msk [vmem:[%s1897_s10 + $0x148] sm:$0xff] %vm1173_vm3, %v1162_v38  ;;  %1280 = vrot.lane.b32.xlu0 %v1162_v38, %s1717_s11  ;;  %v920_v41 = vpop.f32.mrf.mxu2 }
 0x144   : > { %v972_v42 = vadd.f32 %v920_v41, %v799_v40 }
 0x145   : > { %v1253_v43 = vpop.permute.xlu1 %1252 }
 0x146   : > { %1637 = vst.msk [vmem:[%s1897_s10 + $0x78] sm:$0xff] %vm1173_vm3, %v1253_v43  ;;  %v1075_v44 = vpop.f32.mrf.mxu3  ;;  %v801_v45 = vpop.f32.mrf.mxu1 }
 0x147   : > { %v1127_v46 = vadd.f32 %v1075_v44, %v972_v42 }
 0x149   : > { %v1163_v47 = vadd.f32 %v1892_v5, %v1127_v46  ;;  %v621_v48 = vpop.f32.mrf.mxu0 }
 0x14a   : > { %v802_v49 = vadd.f32 %v801_v45, %v621_v48 }
 0x14b   : > { %1196 = vst.msk [vmem:[%s1897_s10 + $0x160] sm:$0xff] %vm1173_vm3, %v1163_v47  ;;  %1282 = vrot.lane.b32.xlu1 %v1163_v47, %s1717_s11  ;;  %v923_v50 = vpop.f32.mrf.mxu2 }
 0x14c   : > { %v973_v51 = vadd.f32 %v923_v50, %v802_v49 }
 0x14d   : > { %v1261_v52 = vpop.permute.xlu2 %1260 }
 0x14e   : > { %1641 = vst.msk [vmem:[%s1897_s10 + $0xb8] sm:$0xff] %vm1173_vm3, %v1261_v52  ;;  %v1078_v53 = vpop.f32.mrf.mxu3  ;;  %v804_v54 = vpop.f32.mrf.mxu1 }
 0x14f   : > { %v1128_v55 = vadd.f32 %v1078_v53, %v973_v51 }
 0x151   : > { %v1164_v56 = vadd.f32 %v1892_v5, %v1128_v55  ;;  %v624_v57 = vpop.f32.mrf.mxu0 }
 0x152   : > { %v805_v58 = vadd.f32 %v804_v54, %v624_v57 }
 0x153   : > { %1197 = vst.msk [vmem:[%s1897_s10 + $0x168] sm:$0xff] %vm1173_vm3, %v1164_v56  ;;  %1284 = vrot.lane.b32.xlu2 %v1164_v56, %s1717_s11  ;;  %v926_v59 = vpop.f32.mrf.mxu2 }
 0x154   : > { %v974_v60 = vadd.f32 %v926_v59, %v805_v58 }
 0x155   : > { %v1257_v61 = vpop.permute.xlu0 %1256 }
 0x156   : > { %1639 = vst.msk [vmem:[%s1897_s10 + $0x98] sm:$0xff] %vm1173_vm3, %v1257_v61  ;;  %v1081_v62 = vpop.f32.mrf.mxu3  ;;  %v807_v63 = vpop.f32.mrf.mxu1 }
 0x157   : > { %v1129_v0 = vadd.f32 %v1081_v62, %v974_v60 }
 0x159   : > { %v1165_v1 = vadd.f32 %v1892_v5, %v1129_v0  ;;  %v627_v2 = vpop.f32.mrf.mxu0 }
 0x15a   : > { %v808_v3 = vadd.f32 %v807_v63, %v627_v2 }
 0x15b   : > { %1198 = vst.msk [vmem:[%s1897_s10 + $0x180] sm:$0xff] %vm1173_vm3, %v1165_v1  ;;  %1286 = vrot.lane.b32.xlu0 %v1165_v1, %s1717_s11  ;;  %v929_v4 = vpop.f32.mrf.mxu2 }
 0x15c   : > { %v975_v6 = vadd.f32 %v929_v4, %v808_v3 }
 0x15d   : > { %v1259_v7 = vpop.permute.xlu1 %1258 }
 0x15e   : > { %1640 = vst.msk [vmem:[%s1897_s10 + $0xb0] sm:$0xff] %vm1173_vm3, %v1259_v7  ;;  %v1084_v8 = vpop.f32.mrf.mxu3  ;;  %v810_v9 = vpop.f32.mrf.mxu1 }
 0x15f   : > { %v1130_v10 = vadd.f32 %v1084_v8, %v975_v6 }
 0x161   : > { %v1166_v11 = vadd.f32 %v1892_v5, %v1130_v10  ;;  %v630_v12 = vpop.f32.mrf.mxu0 }
 0x162   : > { %v811_v13 = vadd.f32 %v810_v9, %v630_v12 }
 0x163   : > { %1199 = vst.msk [vmem:[%s1897_s10 + $0x188] sm:$0xff] %vm1173_vm3, %v1166_v11  ;;  %1288 = vrot.lane.b32.xlu1 %v1166_v11, %s1717_s11  ;;  %v932_v14 = vpop.f32.mrf.mxu2 }
 0x164   : > { %v976_v15 = vadd.f32 %v932_v14, %v811_v13 }
 0x165   : > { %v1267_v16 = vpop.permute.xlu2 %1266 }
 0x166   : > { %1644 = vst.msk [vmem:[%s1897_s10 + $0xf0] sm:$0xff] %vm1173_vm3, %v1267_v16  ;;  %v1087_v17 = vpop.f32.mrf.mxu3  ;;  %v813_v18 = vpop.f32.mrf.mxu1 }
 0x167   : > { %v1131_v19 = vadd.f32 %v1087_v17, %v976_v15 }
 0x169   : > { %v1167_v20 = vadd.f32 %v1892_v5, %v1131_v19  ;;  %v633_v21 = vpop.f32.mrf.mxu0 }
 0x16a   : > { %v814_v22 = vadd.f32 %v813_v18, %v633_v21 }
 0x16b   : > { %1200 = vst.msk [vmem:[%s1897_s10 + $0x1a0] sm:$0xff] %vm1173_vm3, %v1167_v20  ;;  %1290 = vrot.lane.b32.xlu2 %v1167_v20, %s1717_s11  ;;  %v935_v23 = vpop.f32.mrf.mxu2 }
 0x16c   : > { %v977_v24 = vadd.f32 %v935_v23, %v814_v22 }
 0x16d   : > { %v1263_v25 = vpop.permute.xlu0 %1262 }
 0x16e   : > { %1642 = vst.msk [vmem:[%s1897_s10 + $0xd0] sm:$0xff] %vm1173_vm3, %v1263_v25  ;;  %v1090_v26 = vpop.f32.mrf.mxu3  ;;  %v816_v27 = vpop.f32.mrf.mxu1 }
 0x16f   : > { %v1132_v28 = vadd.f32 %v1090_v26, %v977_v24 }
 0x171   : > { %v1168_v29 = vadd.f32 %v1892_v5, %v1132_v28  ;;  %v636_v30 = vpop.f32.mrf.mxu0 }
 0x172   : > { %v817_v31 = vadd.f32 %v816_v27, %v636_v30 }
 0x173   : > { %1201 = vst.msk [vmem:[%s1897_s10 + $0x1a8] sm:$0xff] %vm1173_vm3, %v1168_v29  ;;  %1292 = vrot.lane.b32.xlu0 %v1168_v29, %s1717_s11  ;;  %v938_v32 = vpop.f32.mrf.mxu2 }
 0x174   : > { %v978_v33 = vadd.f32 %v938_v32, %v817_v31 }
 0x175   : > { %v1265_v34 = vpop.permute.xlu1 %1264 }
 0x176   : > { %1643 = vst.msk [vmem:[%s1897_s10 + $0xd8] sm:$0xff] %vm1173_vm3, %v1265_v34  ;;  %v1093_v35 = vpop.f32.mrf.mxu3  ;;  %v819_v36 = vpop.f32.mrf.mxu1 }
 0x177   : > { %v1133_v37 = vadd.f32 %v1093_v35, %v978_v33 }
 0x179   : > { %v1169_v38 = vadd.f32 %v1892_v5, %v1133_v37  ;;  %v639_v39 = vpop.f32.mrf.mxu0 }
 0x17a   : > { %v820_v40 = vadd.f32 %v819_v36, %v639_v39 }
 0x17b   : > { %1202 = vst.msk [vmem:[%s1897_s10 + $0x1c0] sm:$0xff] %vm1173_vm3, %v1169_v38  ;;  %1294 = vrot.lane.b32.xlu1 %v1169_v38, %s1717_s11  ;;  %v941_v41 = vpop.f32.mrf.mxu2 }
 0x17c   : > { %v979_v42 = vadd.f32 %v941_v41, %v820_v40 }
 0x17d   : > { %v1273_v43 = vpop.permute.xlu2 %1272 }
 0x17e   : > { %1647 = vst.msk [vmem:[%s1897_s10 + $0x118] sm:$0xff] %vm1173_vm3, %v1273_v43  ;;  %v1096_v44 = vpop.f32.mrf.mxu3  ;;  %v822_v45 = vpop.f32.mrf.mxu1 }
 0x17f   : > { %v1134_v46 = vadd.f32 %v1096_v44, %v979_v42 }
 0x181   : > { %v1170_v47 = vadd.f32 %v1892_v5, %v1134_v46  ;;  %v642_v48 = vpop.f32.mrf.mxu0 }
 0x182   : > { %v823_v49 = vadd.f32 %v822_v45, %v642_v48 }
 0x183   : > { %1203 = vst.msk [vmem:[%s1897_s10 + $0x1c8] sm:$0xff] %vm1173_vm3, %v1170_v47  ;;  %1296 = vrot.lane.b32.xlu2 %v1170_v47, %s1717_s11  ;;  %v944_v50 = vpop.f32.mrf.mxu2 }
 0x184   : > { %v980_v51 = vadd.f32 %v944_v50, %v823_v49 }
 0x185   : > { %v1269_v52 = vpop.permute.xlu0 %1268 }
 0x186   : > { %1645 = vst.msk [vmem:[%s1897_s10 + $0xf8] sm:$0xff] %vm1173_vm3, %v1269_v52  ;;  %v1099_v53 = vpop.f32.mrf.mxu3  ;;  %v825_v55 = vpop.f32.mrf.mxu1 }
 0x187   : > { %v1135_v54 = vadd.f32 %v1099_v53, %v980_v51 }
 0x189   : > { %v1171_v56 = vadd.f32 %v1892_v5, %v1135_v54  ;;  %v645_v57 = vpop.f32.mrf.mxu0 }
 0x18a   : > { %v826_v58 = vadd.f32 %v825_v55, %v645_v57 }
 0x18b   : > { %1204 = vst.msk [vmem:[%s1897_s10 + $0x1e0] sm:$0xff] %vm1173_vm3, %v1171_v56  ;;  %1298 = vrot.lane.b32.xlu0 %v1171_v56, %s1717_s11  ;;  %v947_v59 = vpop.f32.mrf.mxu2 }
 0x18c   : > { %v981_v60 = vadd.f32 %v947_v59, %v826_v58 }
 0x18d   : > { %v1271_v61 = vpop.permute.xlu1 %1270 }
 0x18e   : > { %1646 = vst.msk [vmem:[%s1897_s10 + $0x110] sm:$0xff] %vm1173_vm3, %v1271_v61  ;;  %v1102_v62 = vpop.f32.mrf.mxu3 }
 0x18f   : > { %v1136_v63 = vadd.f32 %v1102_v62, %v981_v60 }
 0x191   : > { %v1172_v0 = vadd.f32 %v1892_v5, %v1136_v63 }
 0x193   : > { %1205 = vst.msk [vmem:[%s1897_s10 + $0x1e8] sm:$0xff] %vm1173_vm3, %v1172_v0  ;;  %1300 = vrot.lane.b32.xlu1 %v1172_v0, %s1717_s11 }
 0x195   : > { %v1279_v1 = vpop.permute.xlu2 %1278 }
 0x196   : > { %1650 = vst.msk [vmem:[%s1897_s10 + $0x150] sm:$0xff] %vm1173_vm3, %v1279_v1 }
 0x19d   : > { %v1275_v2 = vpop.permute.xlu0 %1274 }
 0x19e   : > { %1648 = vst.msk [vmem:[%s1897_s10 + $0x130] sm:$0xff] %vm1173_vm3, %v1275_v2 }
 0x1a5   : > { %v1277_v3 = vpop.permute.xlu1 %1276 }
 0x1a6   : > { %1649 = vst.msk [vmem:[%s1897_s10 + $0x138] sm:$0xff] %vm1173_vm3, %v1277_v3 }
 0x1ad   : > { %v1285_v4 = vpop.permute.xlu2 %1284 }
 0x1ae   : > { %1653 = vst.msk [vmem:[%s1897_s10 + $0x178] sm:$0xff] %vm1173_vm3, %v1285_v4 }
 0x1b5   : > { %v1281_v5 = vpop.permute.xlu0 %1280 }
 0x1b6   : > { %1651 = vst.msk [vmem:[%s1897_s10 + $0x158] sm:$0xff] %vm1173_vm3, %v1281_v5 }
 0x1bd   : > { %v1283_v6 = vpop.permute.xlu1 %1282 }
 0x1be   : > { %1652 = vst.msk [vmem:[%s1897_s10 + $0x170] sm:$0xff] %vm1173_vm3, %v1283_v6 }
 0x1c5   : > { %v1291_v7 = vpop.permute.xlu2 %1290 }
 0x1c6   : > { %1656 = vst.msk [vmem:[%s1897_s10 + $0x1b0] sm:$0xff] %vm1173_vm3, %v1291_v7 }
 0x1cd   : > { %v1287_v8 = vpop.permute.xlu0 %1286 }
 0x1ce   : > { %1654 = vst.msk [vmem:[%s1897_s10 + $0x190] sm:$0xff] %vm1173_vm3, %v1287_v8 }
 0x1d5   : > { %v1289_v9 = vpop.permute.xlu1 %1288 }
 0x1d6   : > { %1655 = vst.msk [vmem:[%s1897_s10 + $0x198] sm:$0xff] %vm1173_vm3, %v1289_v9 }
 0x1dd   : > { %v1297_v10 = vpop.permute.xlu2 %1296 }
 0x1de   : > { %1659 = vst.msk [vmem:[%s1897_s10 + $0x1d8] sm:$0xff] %vm1173_vm3, %v1297_v10 }
 0x1e5   : > { %v1293_v11 = vpop.permute.xlu0 %1292 }
 0x1e6   : > { %1657 = vst.msk [vmem:[%s1897_s10 + $0x1b8] sm:$0xff] %vm1173_vm3, %v1293_v11 }
 0x1ed   : > { %v1295_v12 = vpop.permute.xlu1 %1294 }
 0x1ee   : > { %1658 = vst.msk [vmem:[%s1897_s10 + $0x1d0] sm:$0xff] %vm1173_vm3, %v1295_v12 }
 0x1fd   : > { %v1299_v13 = vpop.permute.xlu0 %1298 }
 0x1fe   : > { %1660 = vst.msk [vmem:[%s1897_s10 + $0x1f0] sm:$0xff] %vm1173_vm3, %v1299_v13 }
 0x205   : > { %v1301_v14 = vpop.permute.xlu1 %1300 }
 0x206   : > { %1661 = vst.msk [vmem:[%s1897_s10 + $0x1f8] sm:$0xff] %vm1173_vm3, %v1301_v14 }
 0x207 PF: > { %s14_s17 = sadd.s32 1, %s1715_s17   ;;  %s2226_s15 = smov %s1711_s16 }
 0x208   : > { %p11_p5 = scmp.ge.s32.totalorder %s14_s17, 4   ;;  %s2227_s16 = smov %s2229_s18 }
 0x20a   :  { %13 = sbr.rel (!%p11_p5) target bundleno = 2 (0x2), region = 73 }

</bundles_post_ra>
